<compile_context>
chip_gen: v6e
topology: v6e:2x2x1
jax: 0.10.0
libtpu: 0.0.40
codegen_flags: <defaults>
</compile_context>

<pallas_src>
import functools

import jax
import jax.numpy as jnp
from jax import lax
from jax.experimental import pallas as pl
from jax.experimental.pallas import tpu as pltpu

LANES = 128
SUBLANES = 8


def _wmse_kernel(pred_ref, tgt_ref, out_ref, *, fg, bg, rows_valid,
                 num_blocks, blocks_per_core, row_tile, has_partial):
    """Accumulate the weighted squared-error sum of one (row_tile, 128) block
    into this core's resident (1, 8, 128) f32 output block."""
    c = pl.program_id(0)              # core-split index ("parallel")
    r = pl.program_id(1)              # reduction step within this core
    blk = c * blocks_per_core + r     # logical block index (may overhang)

    # Zero this core's accumulator at the start of its reduction loop.
    @pl.when(r == 0)
    def _():
        out_ref[...] = jnp.zeros_like(out_ref)

    # Native-dtype loads, upcast to f32 for the math (exact for bf16 inputs).
    p = pred_ref[...].astype(jnp.float32)
    t = tgt_ref[...].astype(jnp.float32)
    diff = p - t
    w = jnp.where(t > 0, jnp.float32(fg), jnp.float32(bg))
    wse = w * (diff * diff)

    def accumulate(x):
        # Vreg-shaped partial reduction: (row_tile,128) -> (8,128) by summing
        # over the leading axis = pure VPU adds, no per-step XLU reduce.
        part = jnp.sum(x.reshape(row_tile // SUBLANES, SUBLANES, LANES), axis=0)
        out_ref[...] += part[None, :, :]

    if has_partial:
        # Full blocks: zero mask work at runtime.
        @pl.when(blk < num_blocks - 1)
        def _():
            accumulate(wse)

        # The single partial (last) block: mask rows past the true row count.
        # (The clamped overhang block on the other core has blk >= num_blocks
        # and is excluded by both branches.)
        @pl.when(blk == num_blocks - 1)
        def _():
            row_ids = (num_blocks - 1) * row_tile + lax.broadcasted_iota(
                jnp.int32, wse.shape, 0)
            accumulate(jnp.where(row_ids < rows_valid, wse, 0.0))
    else:
        # No partial block exists; only skip the clamped overhang block.
        @pl.when(blk < num_blocks)
        def _():
            accumulate(wse)


def weighted_mse_loss(predictions, targets,
                      foreground_weight=500.0, background_weight=5.0,
                      row_tile=4096):
    """Pallas TPU weighted MSE loss.

    predictions/targets: any shape (e.g. (B, C, D, H, W) heatmaps); only the
    element count matters.  bf16 inputs are supported and recommended (2x less
    HBM traffic); accumulation is always f32.
    """
    assert predictions.shape == targets.shape
    fg = float(foreground_weight)
    bg = float(background_weight)
    total = int(predictions.size)

    p = predictions.reshape(-1)   # free for contiguous inputs
    t = targets.reshape(-1)

    rows, rem = divmod(total, LANES)

    if rows == 0 or rem != 0:
        # Rare path (element count not a multiple of 128): one fused jnp pass
        # reads each input exactly once -- cheaper than the full-array
        # prefix-slice copy a kernel bulk path would require.
        pf = p.astype(jnp.float32)
        tf = t.astype(jnp.float32)
        d = pf - tf
        w = jnp.where(tf > 0, jnp.float32(fg), jnp.float32(bg))
        return jnp.sum(w * d * d) / jnp.float32(total)

    p2 = p.reshape(rows, LANES)   # zero-copy: rows * 128 == total
    t2 = t.reshape(rows, LANES)

    # Row tile: multiple of 8, clamped to the (8-padded) row count.
    req = max(SUBLANES, (int(row_tile) // SUBLANES) * SUBLANES)
    rt = max(SUBLANES, min(req, pl.cdiv(rows, SUBLANES) * SUBLANES))

    nb = pl.cdiv(rows, rt)            # row blocks (last may be partial)
    ncores = 2 if nb >= 2 else 1      # always split across both TCs on v7x
    bpc = pl.cdiv(nb, ncores)         # blocks per core (last core may overhang)
    has_partial = (rows % rt) != 0

    kernel = functools.partial(
        _wmse_kernel, fg=fg, bg=bg, rows_valid=rows, num_blocks=nb,
        blocks_per_core=bpc, row_tile=rt, has_partial=has_partial)

    if ncores * bpc > nb:
        # Odd block count: clamp the last core's overhanging block index to a
        # valid block (its contribution is skipped inside the kernel).
        def in_idx(c, r):
            return (jnp.minimum(c * bpc + r, nb - 1), 0)
    else:
        def in_idx(c, r):
            return (c * bpc + r, 0)

    itemsize = jnp.dtype(predictions.dtype).itemsize
    cost = pl.CostEstimate(
        flops=6 * rows * LANES,
        transcendentals=0,
        bytes_accessed=2 * rows * LANES * itemsize
        + ncores * SUBLANES * LANES * 4)

    partials = pl.pallas_call(
        kernel,
        out_shape=jax.ShapeDtypeStruct((ncores, SUBLANES, LANES), jnp.float32),
        grid_spec=pltpu.PrefetchScalarGridSpec(
            num_scalar_prefetch=0,
            grid=(ncores, bpc),
            in_specs=[
                pl.BlockSpec((rt, LANES), in_idx),
                pl.BlockSpec((rt, LANES), in_idx),
            ],
            out_specs=pl.BlockSpec((1, SUBLANES, LANES),
                                   lambda c, r: (c, 0, 0)),
        ),
        compiler_params=pltpu.CompilerParams(
            # Leading axis is independent per core ("parallel" -> megacore
            # sharding on v7x); reduction axis last, "arbitrary".
            dimension_semantics=("parallel", "arbitrary"),
        ),
        cost_estimate=cost,
    )(p2, t2)

    # Single epilogue reduction (tiny: ncores*8*128 floats) + true mean.
    return jnp.sum(partials) / jnp.float32(total)


def weighted_mse_loss_ref(predictions, targets,
                          foreground_weight=500.0, background_weight=5.0):
    p = predictions.astype(jnp.float32)
    t = targets.astype(jnp.float32)
    mse = (p - t) ** 2
    w = jnp.where(t > 0, foreground_weight, background_weight)
    return jnp.mean(w * mse)


def _make_inputs(key, shape):
    k1, k2, k3 = jax.random.split(key, 3)
    predictions = jax.random.normal(k1, shape, dtype=jnp.float32)
    raw = jax.random.normal(k2, shape, dtype=jnp.float32)
    mask = jax.random.uniform(k3, shape) < 0.1
    targets = jnp.where(mask, jnp.abs(raw), 0.0).astype(jnp.float32)
    return predictions, targets


if __name__ == "__main__":
    key = jax.random.PRNGKey(0)
    keys = jax.random.split(key, 5)

    # (shape, row_tile) cases -- small (B, C, D, H, W) heatmap shapes; the
    # row_tile is shrunk where needed to exercise every kernel code path.
    cases = [
        # Odd block count (3), masked partial last block, 2-core split with a
        # clamped/skipped overhang block.
        ((2, 1, 9, 32, 64), 128),
        # Even block count (4), no partial block (mask compiled out).
        ((2, 1, 8, 32, 64), 64),
        # Single full block, default tile (hot fast path).
        ((1, 2, 4, 16, 32), 4096),
        # Row count not a multiple of 8: single padded block with row mask.
        ((1, 1, 4, 40, 80), 4096),
        # Element count not a multiple of 128: fused-jnp fallback path.
        ((1, 1, 5, 7, 9), 4096),
    ]

    for k, (shape, rtile) in zip(keys, cases):
        preds, tgts = _make_inputs(k, shape)
        loss = weighted_mse_loss(preds, tgts, row_tile=rtile)
        jax.block_until_ready(loss)
        ref = weighted_mse_loss_ref(preds, tgts)
        # All summands are non-negative (no cancellation); the only
        # kernel-vs-reference difference is f32 reduction order, so a 1e-3
        # relative tolerance is ample while still catching real logic bugs.
        assert jnp.allclose(loss, ref, rtol=1e-3, atol=1e-5), (shape, loss, ref)

    print("KERNEL_OK")
</pallas_src>

<mosaic_0001>
module attributes {stable_mosaic.version = 11 : i64} {
  func.func @_wmse_kernel(%arg0: i32, %arg1: i32, %arg2: memref<128x128xf32, #tpu.memory_space<vmem>>, %arg3: memref<128x128xf32, #tpu.memory_space<vmem>>, %arg4: memref<1x8x128xf32, #tpu.memory_space<vmem>>) attributes {dimension_semantics = [#tpu.dimension_semantics<parallel>, #tpu.dimension_semantics<arbitrary>], iteration_bounds = array<i64: 2, 2>, scalar_prefetch = 0 : i64, scratch_operands = 0 : i64, tpu.core_type = #tpu.core_type<tc>, window_params = [{transform_indices = @transform_0, window_bounds = array<i64: 128, 128>}, {transform_indices = @transform_1, window_bounds = array<i64: 128, 128>}, {transform_indices = @transform_2, window_bounds = array<i64: 1, 8, 128>}]} {
    %c2_i32 = arith.constant 2 : i32
    %0 = arith.muli %arg0, %c2_i32 : i32
    %1 = arith.addi %0, %arg1 : i32
    %c0_i32 = arith.constant 0 : i32
    %2 = arith.cmpi eq, %arg1, %c0_i32 : i32
    %3 = arith.extui %2 : i1 to i32
    %c0_i32_0 = arith.constant 0 : i32
    %4 = arith.cmpi ne, %3, %c0_i32_0 : i32
    scf.if %4 {
      %cst_10 = arith.constant 0.000000e+00 : f32
      %21 = vector.broadcast %cst_10 : f32 to vector<1x8x128xf32>
      %c0_11 = arith.constant 0 : index
      %c0_12 = arith.constant 0 : index
      %c0_13 = arith.constant 0 : index
      %22 = vector.load %arg4[%c0_11, %c0_12, %c0_13] : memref<1x8x128xf32, #tpu.memory_space<vmem>>, vector<1x8x128xf32>
      tpu.vector_store %arg4[%c0_11, %c0_12, %c0_13], %21 {strides = array<i32>} : memref<1x8x128xf32, #tpu.memory_space<vmem>>, vector<1x8x128xf32>,
    } else {
    }
    %c0 = arith.constant 0 : index
    %c0_1 = arith.constant 0 : index
    %5 = vector.load %arg2[%c0, %c0_1] : memref<128x128xf32, #tpu.memory_space<vmem>>, vector<128x128xf32>
    %c0_2 = arith.constant 0 : index
    %c0_3 = arith.constant 0 : index
    %6 = vector.load %arg3[%c0_2, %c0_3] : memref<128x128xf32, #tpu.memory_space<vmem>>, vector<128x128xf32>
    %7 = arith.subf %5, %6 : vector<128x128xf32>
    %cst = arith.constant 0.000000e+00 : f32
    %8 = vector.broadcast %cst : f32 to vector<128x128xf32>
    %9 = arith.cmpf ogt, %6, %8 : vector<128x128xf32>
    %cst_4 = arith.constant 5.000000e+02 : f32
    %cst_5 = arith.constant 5.000000e+00 : f32
    %10 = vector.broadcast %cst_4 : f32 to vector<128x128xf32>
    %11 = vector.broadcast %cst_5 : f32 to vector<128x128xf32>
    %12 = arith.select %9, %10, %11 : vector<128x128xi1>, vector<128x128xf32>
    %13 = arith.mulf %7, %7 : vector<128x128xf32>
    %14 = arith.mulf %12, %13 : vector<128x128xf32>
    %c2_i32_6 = arith.constant 2 : i32
    %15 = arith.cmpi slt, %1, %c2_i32_6 : i32
    %16 = arith.extui %15 : i1 to i32
    %c0_i32_7 = arith.constant 0 : i32
    %17 = arith.cmpi ne, %16, %c0_i32_7 : i32
    scf.if %17 {
      %21 = vector.shape_cast %14 : vector<128x128xf32> to vector<16x8x128xf32>
      %cst_10 = arith.constant dense<0.000000e+00> : vector<8x128xf32>
      %22 = vector.multi_reduction <add>, %21, %cst_10 [0] : vector<16x8x128xf32> to vector<8x128xf32>
      %c0_11 = arith.constant 0 : index
      %c0_12 = arith.constant 0 : index
      %c0_13 = arith.constant 0 : index
      %23 = vector.load %arg4[%c0_11, %c0_12, %c0_13] : memref<1x8x128xf32, #tpu.memory_space<vmem>>, vector<1x8x128xf32>
      %24 = vector.shape_cast %22 : vector<8x128xf32> to vector<1x8x128xf32>
      %25 = arith.addf %23, %24 : vector<1x8x128xf32>
      %c0_14 = arith.constant 0 : index
      %c0_15 = arith.constant 0 : index
      %c0_16 = arith.constant 0 : index
      %26 = vector.load %arg4[%c0_14, %c0_15, %c0_16] : memref<1x8x128xf32, #tpu.memory_space<vmem>>, vector<1x8x128xf32>
      tpu.vector_store %arg4[%c0_14, %c0_15, %c0_16], %25 {strides = array<i32>} : memref<1x8x128xf32, #tpu.memory_space<vmem>>, vector<1x8x128xf32>,
    } else {
    }
    %c2_i32_8 = arith.constant 2 : i32
    %18 = arith.cmpi eq, %1, %c2_i32_8 : i32
    %19 = arith.extui %18 : i1 to i32
    %c0_i32_9 = arith.constant 0 : i32
    %20 = arith.cmpi ne, %19, %c0_i32_9 : i32
    scf.if %20 {
      %21 = tpu.iota {dimensions = array<i32: 0>} : vector<128x128xi32>
      %c256_i32 = arith.constant 256 : i32
      %22 = vector.broadcast %c256_i32 : i32 to vector<128x128xi32>
      %23 = arith.addi %22, %21 : vector<128x128xi32>
      %c288_i32 = arith.constant 288 : i32
      %24 = vector.broadcast %c288_i32 : i32 to vector<128x128xi32>
      %25 = arith.cmpi slt, %23, %24 : vector<128x128xi32>
      %cst_10 = arith.constant 0.000000e+00 : f32
      %26 = vector.broadcast %cst_10 : f32 to vector<128x128xf32>
      %27 = arith.select %25, %14, %26 : vector<128x128xi1>, vector<128x128xf32>
      %28 = vector.shape_cast %27 : vector<128x128xf32> to vector<16x8x128xf32>
      %cst_11 = arith.constant dense<0.000000e+00> : vector<8x128xf32>
      %29 = vector.multi_reduction <add>, %28, %cst_11 [0] : vector<16x8x128xf32> to vector<8x128xf32>
      %c0_12 = arith.constant 0 : index
      %c0_13 = arith.constant 0 : index
      %c0_14 = arith.constant 0 : index
      %30 = vector.load %arg4[%c0_12, %c0_13, %c0_14] : memref<1x8x128xf32, #tpu.memory_space<vmem>>, vector<1x8x128xf32>
      %31 = vector.shape_cast %29 : vector<8x128xf32> to vector<1x8x128xf32>
      %32 = arith.addf %30, %31 : vector<1x8x128xf32>
      %c0_15 = arith.constant 0 : index
      %c0_16 = arith.constant 0 : index
      %c0_17 = arith.constant 0 : index
      %33 = vector.load %arg4[%c0_15, %c0_16, %c0_17] : memref<1x8x128xf32, #tpu.memory_space<vmem>>, vector<1x8x128xf32>
      tpu.vector_store %arg4[%c0_15, %c0_16, %c0_17], %32 {strides = array<i32>} : memref<1x8x128xf32, #tpu.memory_space<vmem>>, vector<1x8x128xf32>,
    } else {
    }
    return
  }
  func.func @transform_0(%arg0: i32, %arg1: i32) -> (i32, i32) {
    %c2_i32 = arith.constant 2 : i32
    %0 = arith.muli %arg0, %c2_i32 : i32
    %1 = arith.addi %0, %arg1 : i32
    %c2_i32_0 = arith.constant 2 : i32
    %2 = arith.minsi %1, %c2_i32_0 : i32
    %c0_i32 = arith.constant 0 : i32
    %c0_i32_1 = arith.constant 0 : i32
    return %2, %c0_i32 : i32, i32
  }
  func.func @transform_1(%arg0: i32, %arg1: i32) -> (i32, i32) {
    %c2_i32 = arith.constant 2 : i32
    %0 = arith.muli %arg0, %c2_i32 : i32
    %1 = arith.addi %0, %arg1 : i32
    %c2_i32_0 = arith.constant 2 : i32
    %2 = arith.minsi %1, %c2_i32_0 : i32
    %c0_i32 = arith.constant 0 : i32
    %c0_i32_1 = arith.constant 0 : i32
    return %2, %c0_i32 : i32, i32
  }
  func.func @transform_2(%arg0: i32, %arg1: i32) -> (i32, i32, i32) {
    %c0_i32 = arith.constant 0 : i32
    %c0_i32_0 = arith.constant 0 : i32
    %c0_i32_1 = arith.constant 0 : i32
    return %arg0, %c0_i32, %c0_i32_0 : i32, i32, i32
  }
}

</mosaic_0001>

<bundles_post_ra>
// kernel: tpu_custom_call.1
= control target key start
LH: loop header
LB: loop body
LE: loop exit
PB: predicated region body
PF: predicated region fallthrough
CT: control target
= control target key end

     0   :  { %s1284_s0 = inlined_call_operand.hbm [shape: f32[288,128], index: 0, kind: input, shape index: {}]   ;;  %s1285_s1 = inlined_call_operand.hbm [shape: f32[288,128], index: 1, kind: input, shape index: {}]   ;;  %s1286_s2 = inlined_call_operand.hbm [shape: f32[2,8,128], index: 2, kind: output, shape index: {}]  }
   0x1   :  { %1290 = sst [smem:[#allocation14_spill]] %s1284_s0 }
   0x2   :  { %7 = vsyncpa [#allocation3], 0 }
   0x3   :  { %9 = vsyncpa [#allocation3 + $0x1], 0 }
   0x4   :  { %10 = vsyncpa [#allocation6], 0 }
   0x5   :  { %12 = vsyncpa [#allocation6 + $0x1], 0 }
   0x6   :  { %13 = vsyncpa [#allocation4], 0 }
   0x7   :  { %15 = vsyncpa [#allocation4 + $0x1], 0  ;;  %s957_s9 = smov 0   ;;  %s959_s10 = smov 0  }
   0x8   :  { %s961_s11 = smov 0   ;;  %s963_s12 = smov 0  }
   0x9   :  { %s965_s13 = smov 0   ;;  %s967_s14 = smov 0  }
   0xa   :  { %s969_s15 = smov 0   ;;  %s971_s16 = smov 0  }
   0xb   :  { %s973_s17 = smov 0   ;;  %s975_s18 = smov 0  }
   0xc   :  { %s977_s19 = smov 0  }
   0xd LB: > { %1291 = sst [smem:[#allocation11_spill]] %s927_s18  ;;  %s614_s20 = sadd.s32 4294967295, %s931_s19   ;;  %s931_s19 = sphi %s977_s19, %s21_s19   ;;  %s927_s18 = sphi %s975_s18, %s1302_s18   ;;  %s923_s17 = sphi %s973_s17, %s1310_s17   ;;  %s919_s16 = sphi %s971_s16, %s1300_s16   ;;  %s915_s15 = sphi %s969_s15, %s1309_s15   ;;  %s911_s14 = sphi %s967_s14, %s1308_s14   ;;  %s907_s13 = sphi %s965_s13, %s1307_s13   ;;  %s903_s12 = sphi %s963_s12, %s1306_s12   ;;  %s899_s11 = sphi %s961_s11, %s1305_s11   ;;  %s895_s10 = sphi %s959_s10, %s1304_s10   ;;  %s891_s9 = sphi %s957_s9, %s1303_s9  }
   0xe   : > { %s615_s21 = sadd.s32 4294967294, %s931_s19   ;;  %s30_s22 = sadd.s32 1, %s923_s17 }
   0xf   : > { %s33_s23 = sadd.s32 1, %s927_s18  ;;  %p31_p0 = scmp.ge.s32.totalorder %s30_s22, 2 }
  0x10   : > { %s616_s24 = sshll.u32 %s927_s18, 1  ;;  %s48_s26 = sadd.s32 1, %s911_s14 }
  0x11   : > { %s38_s25 = sadd.s32 %s923_s17, %s616_s24  ;;  %s1312_s22 = smov (%p31_p0, %s30_s22), 0 }
  0x12   : > { %1292 = sst [smem:[#allocation12_spill]] %s1312_s22  ;;  %s1314_s23 = smov (!%p31_p0, %s33_s23), %s927_s18 }
  0x13   : > { %p39_p1 = scmp.lt.s32.totalorder %s38_s25, 2  ;;  %p55_p2 = scmp.ne.s32.totalorder %s911_s14, %s907_s13 }
  0x14   : > { %p35_p3 = scmp.ge.s32.totalorder %s1314_s23, 2  ;;  %p56_p4 = scmp.eq.s32.totalorder %s931_s19, 0 }
  0x15   : > { %s1316_s25 = smov (!%p39_p1, %s38_s25), 2  ;;  %p61_p6 = scmp.ne.s32.totalorder %s907_s13, %s903_s12 }
  0x16   : > { %s1318_s23 = smov (%p35_p3, %s1314_s23), 0  ;;  %p1029_p5 = por %p56_p4, %p55_p2 }
  0x17   : > { %1293 = sst [smem:[#allocation13_spill]] %s1318_s23  ;;  %s617_s28 = sshll.u32 %s1318_s23, 1 }
  0x18   : > { %p62_p7 = scmp.eq.s32.totalorder %s614_s20, 0  ;;  %s42_s29 = sadd.s32 %s617_s28, %s1312_s22 }
  0x19   : > { %s105_s30 = ssub.s32 %s927_s18, %s1318_s23  ;;  %p43_p8 = scmp.lt.s32.totalorder %s42_s29, 2 }
  0x1a   : > { %p1041_p9 = por %p62_p7, %p61_p6  ;;  %p106_p10 = scmp.eq.s32.totalorder %s105_s30, 0 }
  0x1b   : > { %s108_s4 = sadd.s32 1, %s899_s11  ;;  %s1320_s29 = smov (!%p43_p8, %s42_s29), 2 }
  0x1c   : > { %s1047_s5 = scalar_select %p106_p10, %s899_s11, %s108_s4  }
  0x1d   : > { %s45_s6 = ssub.s32 %s1316_s25, %s1320_s29  ;;  %p118_p11 = scmp.ne.s32.totalorder %s899_s11, %s895_s10 }
  0x1e   : > { %p46_p12 = scmp.eq.s32.totalorder %s45_s6, 0  ;;  %p119_p13 = scmp.eq.s32.totalorder %s614_s20, 3 }
  0x1f   : > { %p124_p0 = scmp.ne.s32.totalorder %s895_s10, %s891_s9  ;;  %p125_p1 = scmp.eq.s32.totalorder %s615_s21, 3 }
  0x20   : > { %s1059_s7 = scalar_select %p46_p12, %s911_s14, %s48_s26  }
  0x21   : > { %p1061_p2 = por %p119_p13, %p118_p11  ;;  %p1065_p3 = por %p125_p1, %p124_p0 }
  0x22   : > { %p621_p4 = scmp.ge.s32.totalorder %s931_s19, 4 }
  0x23   : > { %s1297_s12 = scalar_select %p1065_p3, 1, 0 }
  0x24   : > { %141 = sbr.rel (%p621_p4) target bundleno = 111 (0x6f), region = 16 }
  0x29   : > { %144 = sbr.rel (!%p1029_p5) target bundleno = 79 (0x4f), region = 20  ;;  %s145_s20 = sand.u32 (%p1029_p5), 1, %s911_s14  }
  0x2a   : > { %s624_s21 = sshll.u32 (%p1029_p5), %s1316_s25, 4  ;;  %s622_s24 = sshll.u32 (%p1029_p5), %s145_s20, 7 }
  0x2b   : > { %s155_s26 = ssub.s32 (%p1029_p5), 36, %s624_s21  ;;  %s1077_s30 = scalar_lea.sflag (%p1029_p5), [#allocation3], %s145_s20 }
  0x2c   : > { %p156_p6 = scmp.lt.s32.totalorder (%p1029_p5), %s155_s26, 16  ;;  %s149_s4 = scalar_lea.vmem (%p1029_p5), [#allocation2], %s622_s24 }
  0x2e   : > { %s1322_s26 = smov (!%p156_p6, %s155_s26), 16 }
  0x2f   : > { %s1074_s28 = sshll.u32 %s1322_s26, 7 }
  0x30   : > { %s160_s29 = ssub.s32 2048, %s1074_s28 }
  0x31   : > { %161 = vsyncadd %s1077_s30, %s160_s29  ;;  %p626_p7 = scmp.ne.s32.totalorder %s1074_s28, 0  ;;  %s650_s6 = sshll.u32 %s1316_s25, 11 }
  0x32   : > { %s1298_s0 = sld [smem:[#allocation14_spill]]  ;;  %s166_s26 = sshll.u32 %s149_s4, 4  ;;  %s1087_s26 = int_to_ptr.vmem [resolvable:$true] %s166_s26 }
  0x38   : > { %s1085_s21 = scalar_lea.hbm %s1298_s0, %s650_s6  ;;  %s759_s18 = scalar_lea.hbm %s1298_s0, 4608 }
  0x39   : > { %s755_s20 = scalar_lea.hbm %s1085_s21, %s1074_s28 }
  0x3a   : > { %p756_p8 = scmp.ne.s32.totalorder %s1085_s21, %s755_s20  ;;  %p761_p12 = scmp.lt.s32.totalorder %s759_s18, %s755_s20 }
  0x3c   : > { %p757_p10 = pnand %p756_p8, %p626_p7 }
  0x3e   : > { %p758_p11 = pneg %p757_p10 }
  0x40   : > { %p763_p13 = pnand %p761_p12, %p758_p11 }
  0x42   : > { %766 = shalt.err (!%p763_p13)
}
  0x43   : > { %s767_s22 = scalar_lea.vmem %s1087_s26, %s1074_s28  ;;  %s933_s23 = smov [#allocation2]  }
  0x44   : > { %p768_p0 = scmp.ne.s32.totalorder %s1087_s26, %s767_s22  ;;  %s771_s4 = sshll.u32 %s933_s23, 4  ;;  %s772_s4 = int_to_ptr.vmem [resolvable:$false] %s771_s4 }
  0x45   : > { %s773_s6 = scalar_lea.vmem %s772_s4, 4096  ;;  %p774_p6 = scmp.lt.s32.totalorder %s1087_s26, %s772_s4 }
  0x46   : > { %p769_p1 = pnand %p768_p0, %p626_p7  ;;  %p775_p8 = scmp.lt.s32.totalorder %s773_s6, %s767_s22 }
  0x48   : > { %p770_p4 = pneg %p769_p1  ;;  %p776_p10 = por %p775_p8, %p774_p6 }
  0x4a   : > { %p777_p3 = pnand %p776_p10, %p770_p4 }
  0x4c   : > { %780 = shalt.err (!%p777_p3)
}
  0x4d   : > { %s934_s18 = smov 128   ;;  %s935_s20 = smov 8  }
  0x4e   : > { %172 = dma.hbm_to_vmem [thread:$0]  (%p626_p7), %s1085_s21, %s1074_s28, %s1087_s26, %s1077_s30, %s934_s18, %s934_s18, %s935_s20  }
  0x4f PF: > { %175 = sbr.rel (!%p1029_p5) target bundleno = 111 (0x6f), region = 24  ;;  %s176_s24 = sand.u32 (%p1029_p5), 1, %s911_s14  }
  0x50   : > { %s632_s29 = sshll.u32 (%p1029_p5), %s1316_s25, 4  ;;  %s630_s22 = sshll.u32 (%p1029_p5), %s176_s24, 7 }
  0x51   : > { %s186_s23 = ssub.s32 (%p1029_p5), 36, %s632_s29  ;;  %s1116_s0 = scalar_lea.sflag (%p1029_p5), [#allocation6], %s176_s24 }
  0x52   : > { %p187_p3 = scmp.lt.s32.totalorder (%p1029_p5), %s186_s23, 16  ;;  %s180_s28 = scalar_lea.vmem (%p1029_p5), [#allocation5], %s630_s22 }
  0x54   : > { %s1324_s23 = smov (!%p187_p3, %s186_s23), 16 }
  0x55   : > { %s1113_s4 = sshll.u32 %s1324_s23, 7 }
  0x56   : > { %s191_s6 = ssub.s32 2048, %s1113_s4 }
  0x57   : > { %192 = vsyncadd %s1116_s0, %s191_s6  ;;  %p634_p5 = scmp.ne.s32.totalorder %s1113_s4, 0  ;;  %s651_s27 = sshll.u32 %s1316_s25, 11 }
  0x58   : > { %s1124_s26 = scalar_lea.hbm %s1285_s1, %s651_s27  ;;  %s197_s18 = sshll.u32 %s180_s28, 4  ;;  %s1126_s18 = int_to_ptr.vmem [resolvable:$true] %s197_s18 }
  0x59   : > { %s781_s20 = scalar_lea.hbm %s1124_s26, %s1113_s4  ;;  %s785_s22 = scalar_lea.hbm %s1285_s1, 4608 }
  0x5a   : > { %p782_p7 = scmp.ne.s32.totalorder %s1124_s26, %s781_s20  ;;  %p787_p13 = scmp.lt.s32.totalorder %s785_s22, %s781_s20 }
  0x5c   : > { %p783_p11 = pnand %p782_p7, %p634_p5 }
  0x5e   : > { %p784_p12 = pneg %p783_p11 }
  0x60   : > { %p789_p0 = pnand %p787_p13, %p784_p12 }
  0x62   : > { %792 = shalt.err (!%p789_p0)
}
  0x63   : > { %s793_s25 = scalar_lea.vmem %s1126_s18, %s1113_s4  ;;  %s936_s23 = smov [#allocation5]  }
  0x64   : > { %p794_p1 = scmp.ne.s32.totalorder %s1126_s18, %s793_s25  ;;  %s797_s6 = sshll.u32 %s936_s23, 4  ;;  %s798_s6 = int_to_ptr.vmem [resolvable:$false] %s797_s6 }
  0x65   : > { %s799_s28 = scalar_lea.vmem %s798_s6, 4096  ;;  %p800_p8 = scmp.lt.s32.totalorder %s1126_s18, %s798_s6 }
  0x66   : > { %p795_p4 = pnand %p794_p1, %p634_p5  ;;  %p801_p10 = scmp.lt.s32.totalorder %s799_s28, %s793_s25 }
  0x68   : > { %p796_p6 = pneg %p795_p4  ;;  %p802_p3 = por %p801_p10, %p800_p8 }
  0x6a   : > { %p803_p7 = pnand %p802_p3, %p796_p6 }
  0x6c   : > { %806 = shalt.err (!%p803_p7)
}
  0x6d   : > { %s937_s27 = smov 128   ;;  %s938_s30 = smov 8  }
  0x6e   : > { %203 = dma.hbm_to_vmem [thread:$0]  (%p634_p5), %s1124_s26, %s1113_s4, %s1126_s18, %s1116_s0, %s937_s27, %s937_s27, %s938_s30  }
  0x6f PF: > { %p638_p11 = scmp.ge.s32.totalorder %s931_s19, 1  ;;  %p205_p12 = scmp.lt.s32.totalorder %s931_s19, 5 }
  0x71   : > { %p206_p13 = pnand %p638_p11, %p205_p12 }
  0x72   : > { %s211_s21 = sand.u32 (!%p206_p13), 1, %s907_s13  }
  0x73   : > { %209 = sbr.rel (%p206_p13) target bundleno = 232 (0xe8), region = 28  ;;  %s639_s20 = sshll.u32 (!%p206_p13), %s211_s21, 7 }
  0x74   : > { %s212_s24 = scalar_lea.sflag (!%p206_p13), [#allocation3], %s211_s21  ;;  %s1151_s29 = scalar_lea.vmem (!%p206_p13), [#allocation2], %s639_s20 }
  0x78   : > { %878 = dma.done.wait (%p1041_p9), %s212_s24, 2048  }
  0x79   : > { %880 = vsyncadd (%p1041_p9), %s212_s24, 4294965248  ;;  %s221_s0 = scalar_lea.sflag [#allocation6], %s211_s21  ;;  %s1157_s4 = scalar_lea.vmem [#allocation5], %s639_s20 }
  0x7a   : > { %882 = dma.done.wait (%p1041_p9), %s221_s0, 2048  }
  0x7b   : > { %884 = vsyncadd (%p1041_p9), %s221_s0, 4294965248  ;;  %s247_s26 = sand.u32 1, %s895_s10   ;;  %s642_s18 = sshll.u32 %s919_s16, 1 }
  0x7c   : > { %s641_s22 = sshll.u32 %s247_s26, 3  ;;  %s1168_s25 = sadd.s32 %s915_s15, %s642_s18 }
  0x7d   : > { %s1170_s23 = scalar_lea.vmem [#allocation7], %s641_s22  ;;  %p643_p5 = scmp.ne.s32.totalorder %s915_s15, 0 }
  0x7f   : > { %273 = sbr.rel (%p643_p5) target bundleno = 134 (0x86), region = 40 }
  0x84   : > { %v939_v0 = vmov 0.0  }
  0x85   : > { %274 = vst [vmem:[%s1170_s23] sm:$0xff] %v939_v0 }
  0x86 PF: > { %v275_v1 = vld [vmem:[%s1151_s29] sm:$0xff]  ;;  %v276_v2 = vld [vmem:[%s1151_s29 + $0x8] sm:$0xff]  ;;  %v277_v3 = vld [vmem:[%s1151_s29 + $0x10] sm:$0xff]  ;;  %v940_v49 = vmov 5.0   ;;  %p644_p9 = scmp.ge.s32.totalorder %s1168_s25, 2 }
  0x87   : > { %v278_v4 = vld [vmem:[%s1151_s29 + $0x18] sm:$0xff]  ;;  %v279_v5 = vld [vmem:[%s1151_s29 + $0x20] sm:$0xff]  ;;  %v280_v6 = vld [vmem:[%s1151_s29 + $0x28] sm:$0xff] }
  0x88   : > { %v281_v7 = vld [vmem:[%s1151_s29 + $0x30] sm:$0xff]  ;;  %v282_v8 = vld [vmem:[%s1151_s29 + $0x38] sm:$0xff]  ;;  %v283_v9 = vld [vmem:[%s1151_s29 + $0x40] sm:$0xff] }
  0x89   : > { %v284_v10 = vld [vmem:[%s1151_s29 + $0x48] sm:$0xff]  ;;  %v285_v11 = vld [vmem:[%s1151_s29 + $0x50] sm:$0xff]  ;;  %v286_v12 = vld [vmem:[%s1151_s29 + $0x58] sm:$0xff] }
  0x8a   : > { %v287_v13 = vld [vmem:[%s1151_s29 + $0x60] sm:$0xff]  ;;  %v288_v14 = vld [vmem:[%s1151_s29 + $0x68] sm:$0xff]  ;;  %v289_v17 = vld [vmem:[%s1151_s29 + $0x70] sm:$0xff] }
  0x8b   : > { %v291_v15 = vld [vmem:[%s1157_s4] sm:$0xff]  ;;  %v292_v16 = vld [vmem:[%s1157_s4 + $0x8] sm:$0xff]  ;;  %v290_v18 = vld [vmem:[%s1151_s29 + $0x78] sm:$0xff] }
  0x8c   : > { %v293_v19 = vld [vmem:[%s1157_s4 + $0x10] sm:$0xff]  ;;  %v294_v20 = vld [vmem:[%s1157_s4 + $0x18] sm:$0xff]  ;;  %v295_v21 = vld [vmem:[%s1157_s4 + $0x20] sm:$0xff]  ;;  %v307_v22 = vsub.f32 %v275_v1, %v291_v15  ;;  %v308_v23 = vsub.f32 %v276_v2, %v292_v16  ;;  %vm323_vm0 = vcmp.gt.f32.partialorder %v291_v15, 0.0  ;;  %vm324_vm1 = vcmp.gt.f32.partialorder %v292_v16, 0.0 }
  0x8d   : > { %v296_v24 = vld [vmem:[%s1157_s4 + $0x28] sm:$0xff]  ;;  %v297_v25 = vld [vmem:[%s1157_s4 + $0x30] sm:$0xff]  ;;  %v298_v26 = vld [vmem:[%s1157_s4 + $0x38] sm:$0xff]  ;;  %v309_v27 = vsub.f32 %v277_v3, %v293_v19  ;;  %v310_v28 = vsub.f32 %v278_v4, %v294_v20  ;;  %v311_v29 = vsub.f32 %v279_v5, %v295_v21  ;;  %vm325_vm2 = vcmp.gt.f32.partialorder %v293_v19, 0.0 }
  0x8e   : > { %v299_v30 = vld [vmem:[%s1157_s4 + $0x40] sm:$0xff]  ;;  %v300_v31 = vld [vmem:[%s1157_s4 + $0x48] sm:$0xff]  ;;  %v301_v32 = vld [vmem:[%s1157_s4 + $0x50] sm:$0xff]  ;;  %v312_v33 = vsub.f32 %v280_v6, %v296_v24  ;;  %v313_v34 = vsub.f32 %v281_v7, %v297_v25  ;;  %v314_v35 = vsub.f32 %v282_v8, %v298_v26  ;;  %vm326_vm3 = vcmp.gt.f32.partialorder %v294_v20, 0.0 }
  0x8f   : > { %v302_v36 = vld [vmem:[%s1157_s4 + $0x58] sm:$0xff]  ;;  %v303_v37 = vld [vmem:[%s1157_s4 + $0x60] sm:$0xff]  ;;  %v304_v38 = vld [vmem:[%s1157_s4 + $0x68] sm:$0xff]  ;;  %v315_v39 = vsub.f32 %v283_v9, %v299_v30  ;;  %v316_v40 = vsub.f32 %v284_v10, %v300_v31  ;;  %v317_v41 = vsub.f32 %v285_v11, %v301_v32  ;;  %vm327_vm4 = vcmp.gt.f32.partialorder %v295_v21, 0.0 }
  0x90   : > { %v305_v42 = vld [vmem:[%s1157_s4 + $0x70] sm:$0xff]  ;;  %v306_v43 = vld [vmem:[%s1157_s4 + $0x78] sm:$0xff]  ;;  %v318_v44 = vsub.f32 %v286_v12, %v302_v36  ;;  %v319_v45 = vsub.f32 %v287_v13, %v303_v37  ;;  %v320_v46 = vsub.f32 %v288_v14, %v304_v38  ;;  %vm328_vm5 = vcmp.gt.f32.partialorder %v296_v24, 0.0 }
  0x91   : > { %v321_v47 = vsub.f32 %v289_v17, %v305_v42  ;;  %v322_v48 = vsub.f32 %v290_v18, %v306_v43  ;;  %vm329_vm6 = vcmp.gt.f32.partialorder %v297_v25, 0.0  ;;  %vm330_vm7 = vcmp.gt.f32.partialorder %v298_v26, 0.0 }
  0x92   : > { %vm331_vm8 = vcmp.gt.f32.partialorder %v299_v30, 0.0  ;;  %vm332_vm9 = vcmp.gt.f32.partialorder %v300_v31, 0.0  ;;  %vm333_vm10 = vcmp.gt.f32.partialorder %v301_v32, 0.0  ;;  %vm334_vm11 = vcmp.gt.f32.partialorder %v302_v36, 0.0 }
  0x93   : > { %vm335_vm12 = vcmp.gt.f32.partialorder %v303_v37, 0.0  ;;  %vm336_vm13 = vcmp.gt.f32.partialorder %v304_v38, 0.0  ;;  %vm337_vm14 = vcmp.gt.f32.partialorder %v305_v42, 0.0  ;;  %vm338_vm15 = vcmp.gt.f32.partialorder %v306_v43, 0.0 }
  0x94   : > { %v339_v50 = vsel %vm323_vm0, 500.0, %v940_v49  ;;  %v340_v51 = vsel %vm324_vm1, 500.0, %v940_v49  ;;  %v341_v52 = vsel %vm325_vm2, 500.0, %v940_v49  ;;  %v342_v53 = vsel %vm326_vm3, 500.0, %v940_v49 }
  0x95   : > { %v343_v54 = vsel %vm327_vm4, 500.0, %v940_v49  ;;  %v344_v55 = vsel %vm328_vm5, 500.0, %v940_v49  ;;  %v345_v56 = vsel %vm329_vm6, 500.0, %v940_v49  ;;  %v346_v57 = vsel %vm330_vm7, 500.0, %v940_v49 }
  0x96   : > { %v347_v58 = vsel %vm331_vm8, 500.0, %v940_v49  ;;  %v348_v59 = vsel %vm332_vm9, 500.0, %v940_v49  ;;  %v349_v60 = vsel %vm333_vm10, 500.0, %v940_v49  ;;  %v350_v61 = vsel %vm334_vm11, 500.0, %v940_v49 }
  0x97   : > { %v351_v62 = vsel %vm335_vm12, 500.0, %v940_v49  ;;  %v352_v63 = vsel %vm336_vm13, 500.0, %v940_v49  ;;  %v353_v0 = vsel %vm337_vm14, 500.0, %v940_v49  ;;  %v354_v1 = vsel %vm338_vm15, 500.0, %v940_v49 }
  0x98   : > { %v355_v2 = vmul.f32 %v307_v22, %v307_v22  ;;  %v356_v3 = vmul.f32 %v308_v23, %v308_v23  ;;  %v357_v4 = vmul.f32 %v309_v27, %v309_v27  ;;  %v358_v5 = vmul.f32 %v310_v28, %v310_v28 }
  0x99   : > { %v359_v6 = vmul.f32 %v311_v29, %v311_v29  ;;  %v360_v7 = vmul.f32 %v312_v33, %v312_v33  ;;  %v361_v8 = vmul.f32 %v313_v34, %v313_v34  ;;  %v362_v9 = vmul.f32 %v314_v35, %v314_v35 }
  0x9a   : > { %v363_v10 = vmul.f32 %v315_v39, %v315_v39  ;;  %v364_v11 = vmul.f32 %v316_v40, %v316_v40  ;;  %v365_v12 = vmul.f32 %v317_v41, %v317_v41  ;;  %v366_v13 = vmul.f32 %v318_v44, %v318_v44 }
  0x9b   : > { %v367_v14 = vmul.f32 %v319_v45, %v319_v45  ;;  %v368_v15 = vmul.f32 %v320_v46, %v320_v46  ;;  %v369_v16 = vmul.f32 %v321_v47, %v321_v47  ;;  %v370_v17 = vmul.f32 %v322_v48, %v322_v48  ;;  %390 = sbr.rel (%p644_p9) target bundleno = 193 (0xc1), region = 44 }
  0x9c   : > { %v371_v18 = vmul.f32 %v355_v2, %v339_v50  ;;  %v372_v19 = vmul.f32 %v356_v3, %v340_v51  ;;  %v373_v20 = vmul.f32 %v357_v4, %v341_v52  ;;  %v374_v21 = vmul.f32 %v358_v5, %v342_v53 }
  0x9d   : > { %v375_v22 = vmul.f32 %v359_v6, %v343_v54  ;;  %v376_v23 = vmul.f32 %v360_v7, %v344_v55  ;;  %v377_v24 = vmul.f32 %v361_v8, %v345_v56  ;;  %v378_v25 = vmul.f32 %v362_v9, %v346_v57 }
  0x9e   : > { %v379_v26 = vmul.f32 %v363_v10, %v347_v58  ;;  %v380_v27 = vmul.f32 %v364_v11, %v348_v59  ;;  %v381_v28 = vmul.f32 %v365_v12, %v349_v60  ;;  %v382_v29 = vmul.f32 %v366_v13, %v350_v61 }
  0x9f   : > { %v383_v30 = vmul.f32 %v367_v14, %v351_v62  ;;  %v384_v31 = vmul.f32 %v368_v15, %v352_v63  ;;  %v385_v32 = vmul.f32 %v369_v16, %v353_v0  ;;  %v386_v33 = vmul.f32 %v370_v17, %v354_v1 }
  0xa0   : > { %v391_v34 = vadd.f32 %v372_v19, %v371_v18  ;;  %v406_v48 = vld [vmem:[%s1170_s23] sm:$0xff] }
  0xa2   : > { %v392_v35 = vadd.f32 %v391_v34, %v373_v20 }
  0xa4   : > { %v393_v36 = vadd.f32 %v392_v35, %v374_v21 }
  0xa6   : > { %v394_v37 = vadd.f32 %v393_v36, %v375_v22 }
  0xa8   : > { %v395_v38 = vadd.f32 %v394_v37, %v376_v23 }
  0xaa   : > { %v396_v39 = vadd.f32 %v395_v38, %v377_v24 }
  0xac   : > { %v397_v40 = vadd.f32 %v396_v39, %v378_v25 }
  0xae   : > { %v398_v41 = vadd.f32 %v397_v40, %v379_v26 }
  0xb0   : > { %v399_v42 = vadd.f32 %v398_v41, %v380_v27 }
  0xb2   : > { %v400_v43 = vadd.f32 %v399_v42, %v381_v28 }
  0xb4   : > { %v401_v44 = vadd.f32 %v400_v43, %v382_v29 }
  0xb6   : > { %v402_v45 = vadd.f32 %v401_v44, %v383_v30 }
  0xb8   : > { %v403_v46 = vadd.f32 %v402_v45, %v384_v31 }
  0xba   : > { %v404_v47 = vadd.f32 %v403_v46, %v385_v32 }
  0xbc   : > { %v405_v49 = vadd.f32 %v404_v47, %v386_v33 }
  0xbe   : > { %v407_v50 = vadd.f32 %v406_v48, %v405_v49 }
  0xc0   : > { %408 = vst [vmem:[%s1170_s23] sm:$0xff] %v407_v50 }
  0xc1 PF: > { %p645_p0 = scmp.ne.s32.totalorder %s1168_s25, 2 }
  0xc3   : > { %412 = sbr.rel (%p645_p0) target bundleno = 209 (0xd1), region = 48 }
  0xc8   : > { %v478_v51 = vadd.f32 %v372_v19, %v371_v18  ;;  %v493_v53 = vld [vmem:[%s1170_s23] sm:$0xff] }
  0xca   : > { %v479_v52 = vadd.f32 %v478_v51, %v373_v20 }
  0xcc   : > { %v480_v54 = vadd.f32 %v479_v52, %v374_v21 }
  0xce   : > { %v494_v55 = vadd.f32 %v493_v53, %v480_v54 }
  0xd0   : > { %495 = vst [vmem:[%s1170_s23] sm:$0xff] %v494_v55 }
  0xd1 PF: > { %s647_s15 = sshll.u32 %s919_s16, 7  ;;  %s510_s27 = sshll.u32 %s1170_s23, 4  ;;  %s511_s27 = int_to_ptr.vmem [resolvable:$true] %s510_s27 }
  0xd2   : > { %s508_s28 = scalar_lea.hbm %s1286_s2, %s647_s15  ;;  %s497_s30 = scalar_lea.sflag [#allocation4], %s247_s26 }
  0xd3   : > { %s807_s21 = scalar_lea.vmem %s511_s27, 128  ;;  %s941_s20 = smov [#allocation7]  }
  0xd4   : > { %p808_p1 = scmp.ne.s32.totalorder %s511_s27, %s807_s21  ;;  %s811_s24 = sshll.u32 %s941_s20, 4  ;;  %s812_s24 = int_to_ptr.vmem [resolvable:$false] %s811_s24 }
  0xd5   : > { %s813_s29 = scalar_lea.vmem %s812_s24, 256  ;;  %p814_p8 = scmp.lt.s32.totalorder %s511_s27, %s812_s24 }
  0xd6   : > { %p809_p4 = pnand %p808_p1, %p1061_p2  ;;  %p815_p10 = scmp.lt.s32.totalorder %s813_s29, %s807_s21 }
  0xd8   : > { %p810_p6 = pneg %p809_p4  ;;  %p816_p3 = por %p815_p10, %p814_p8 }
  0xda   : > { %p817_p7 = pnand %p816_p3, %p810_p6 }
  0xdc   : > { %820 = shalt.err (!%p817_p7)
}
  0xdd   : > { %s821_s16 = scalar_lea.hbm %s508_s28, 128  ;;  %s825_s26 = scalar_lea.hbm %s1286_s2, 256 }
  0xde   : > { %p822_p11 = scmp.ne.s32.totalorder %s508_s28, %s821_s16  ;;  %p826_p5 = scmp.lt.s32.totalorder %s508_s28, %s1286_s2 }
  0xdf   : > { %p827_p9 = scmp.lt.s32.totalorder %s825_s26, %s821_s16 }
  0xe0   : > { %p823_p12 = pnand %p822_p11, %p1061_p2 }
  0xe1   : > { %p828_p0 = por %p827_p9, %p826_p5 }
  0xe2   : > { %p824_p13 = pneg %p823_p12 }
  0xe4   : > { %p829_p1 = pnand %p828_p0, %p824_p13 }
  0xe6   : > { %832 = shalt.err (!%p829_p1)
}
  0xe7   : > { %654 = dma.vmem_to_hbm [thread:$0]  (%p1061_p2), %s511_s27, 128, %s508_s28, %s497_s30  }
  0xe8 PF: > { %p660_p4 = scmp.ge.s32.totalorder %s931_s19, 2  ;;  %s522_s25 = sand.u32 1, %s891_s9  }
  0xe9   : > { %p1299_p6 = scmp.ne.s32.totalorder %s1297_s12, 0  ;;  %s523_s23 = scalar_lea.sflag [#allocation4], %s522_s25 }
  0xeb   : > { %p657_p8 = pnand %p660_p4, %p1299_p6 }
  0xed   : > { %p658_p10 = pneg %p657_p8 }
  0xef   : > { %886 = dma.done.wait (%p658_p10), %s523_s23, 128  }
  0xf0   : > { %888 = vsyncadd (%p658_p10), %s523_s23, 4294967168  ;;  %s21_s19 = sadd.s32 1, %s931_s19   ;;  %s1300_s16 = sld [smem:[#allocation11_spill]] }
  0xf1   : > { %p18_p3 = scmp.ge.s32.totalorder %s21_s19, 6   ;;  %s1301_s8 = sld [smem:[#allocation12_spill]] }
  0xf2   : > { %s1302_s18 = sld [smem:[#allocation13_spill]]  ;;  %s1303_s9 = smov %s895_s10 }
  0xf3   : > { %s1304_s10 = smov %s899_s11  ;;  %s1305_s11 = smov %s1047_s5 }
  0xf4   : > { %s1306_s12 = smov %s907_s13  ;;  %s1307_s13 = smov %s911_s14 }
  0xf5   : > { %s1308_s14 = smov %s1059_s7  ;;  %s1309_s15 = smov %s923_s17 }
  0xf6   :  { %20 = sbr.rel (!%p18_p3) target bundleno = 13 (0xd), region = 98 }
  0xf7   : > { %s1310_s17 = smov %s1301_s8 }
  0xfb   :  { %528 = vsyncpa [#allocation3], 1 }
  0xfc   :  { %530 = vsyncpa [#allocation3 + $0x1], 1 }
  0xfd   :  { %531 = vsyncpa [#allocation6], 1 }
  0xfe   :  { %533 = vsyncpa [#allocation6 + $0x1], 1 }
  0xff   :  { %534 = vsyncpa [#allocation4], 1 }
 0x100   :  { %536 = vsyncpa [#allocation4 + $0x1], 1 }

</bundles_post_ra>
